<compile_context>
chip_gen: v7x
topology: tpu7x:2x2x1
jax: 0.10.0
libtpu: 0.0.40
codegen_flags: <defaults>
</compile_context>

<pallas_src>
import functools

import jax
import jax.numpy as jnp
from jax.experimental import pallas as pl
from jax.experimental.pallas import tpu as pltpu

_LANE = 128
_PAD_COLS = 128     # lane-aligned guard columns on each side of the scratch signal


def linear_upsample_2x(x):
    """F.interpolate(x, scale_factor=2, mode='linear', align_corners=False) for NCL."""
    xl = jnp.concatenate([x[..., :1], x[..., :-1]], axis=-1)   # x[m-1], edge-clamped
    xr = jnp.concatenate([x[..., 1:], x[..., -1:]], axis=-1)   # x[m+1], edge-clamped
    even = 0.25 * xl + 0.75 * x                                # out[2m]
    odd = 0.75 * x + 0.25 * xr                                 # out[2m+1]
    out = jnp.stack([even, odd], axis=-1)
    return out.reshape(*x.shape[:-1], 2 * x.shape[-1])


def _upsampler_kernel(xu_ref, y_ref, w_ref, b_ref, o_ref, zpad_ref, *,
                      K, pad_l, Lt, Lsig, Cx, Cy, neg_slope):
    # xu_ref : (1, Cx, Lsig)        upsampled x (compute dtype), resident across tiles
    # y_ref  : (1, Cy, Lsig)        lateral input (raw dtype),   resident across tiles
    # w_ref  : (Cout_p, K*Cin_p)    conv weights, (tap, channel)-major columns
    # b_ref  : (Cout_p, 1)          bias (f32)
    # o_ref  : (1, Cout_p, Lt)      output tile (lane-dense)
    # zpad_ref:(Cin_p, Lsig+256)    scratch; signal occupies columns [128, 128+Lsig)
    t = pl.program_id(1)
    Cin_p = zpad_ref.shape[0]
    Cin = Cx + Cy

    # Build the padded, concatenated signal once per batch element (t == 0); later
    # length tiles of the same batch element reuse the scratch (t axis is sequential).
    @pl.when(t == 0)
    def _():
        zero_strip = jnp.zeros((Cin_p, _PAD_COLS), zpad_ref.dtype)
        zpad_ref[:, 0:_PAD_COLS] = zero_strip                               # left pad
        zpad_ref[:, _PAD_COLS + Lsig:_PAD_COLS + Lsig + _PAD_COLS] = zero_strip
        # Lane-aligned interior fill (starts at column 128) — unmasked stores.
        zpad_ref[0:Cx, _PAD_COLS:_PAD_COLS + Lsig] = xu_ref[0].astype(zpad_ref.dtype)
        zpad_ref[Cx:Cin, _PAD_COLS:_PAD_COLS + Lsig] = y_ref[0].astype(zpad_ref.dtype)
        if Cin_p > Cin:   # zero channel-padding rows so the zero weight cols stay 0*0
            zpad_ref[Cin:Cin_p, _PAD_COLS:_PAD_COLS + Lsig] = jnp.zeros(
                (Cin_p - Cin, Lsig), zpad_ref.dtype)

    # One lane-aligned window load per tile; K shifted taps are register slices of it.
    t0 = pl.multiple_of(t * Lt, _LANE)
    win = zpad_ref[:, pl.ds(t0, Lt + 2 * _PAD_COLS)]      # (Cin_p, Lt+256)
    base = _PAD_COLS - pad_l
    slab = jnp.concatenate(
        [win[:, base + k:base + k + Lt] for k in range(K)], axis=0)   # (K*Cin_p, Lt)

    acc = jnp.dot(w_ref[...], slab, preferred_element_type=jnp.float32)  # (Cout_p, Lt)
    acc = acc + b_ref[...]                                 # bias broadcast over length
    o_ref[0] = jnp.where(acc >= 0, acc, neg_slope * acc).astype(o_ref.dtype)


def _round_up(n, m):
    return ((n + m - 1) // m) * m


def _pick_ltile(lout_pad, target):
    """Largest multiple of 128 <= target that divides lout_pad (lout_pad % 128 == 0)."""
    lt = max(_LANE, min(lout_pad, (int(target) // _LANE) * _LANE))
    while lout_pad % lt != 0:
        lt -= _LANE
    return lt


def upsampler_forward(x, y, w, b, *, neg_slope=0.01, ltile=1024,
                      compute_dtype=jnp.bfloat16):
    """x: (N, Cx, L), y: (N, Cy, 2L), w: (Cout, Cin, K), b: (Cout,); Cin = Cx + Cy.

    compute_dtype: dtype of the matmul operands (default bf16, halves HBM reads on a
    memory-bound kernel); accumulation, bias and LeakyReLU are always f32.
    """
    N, Cx, L = x.shape
    Ny, Cy, Lout = y.shape
    assert Ny == N and Lout == 2 * L
    Cout, Cin_w, K = w.shape
    Cin = Cx + Cy
    assert Cin_w == Cin
    assert K - 1 <= _PAD_COLS, "kernel_size too large for the 128-column guard strips"

    cdt = jnp.dtype(compute_dtype or x.dtype)
    out_dtype = x.dtype
    isz = cdt.itemsize
    sub = 8 * max(1, 4 // isz)                       # sublane multiple for cdt

    pad_l = (K - 1) // 2                             # PyTorch padding='same', stride 1

    # 2x linear upsample (align_corners=False) in the wrapper, emitted in cdt.
    # TODO(synk): even/odd lane interleave has no clean Mosaic stride-2 store.
    xu = linear_upsample_2x(x).astype(cdt)           # (N, Cx, Lout)

    # Pad length to a lane multiple so every output tile is lane-dense.
    Lp = _round_up(Lout, _LANE)
    if Lp != Lout:
        xu = jnp.pad(xu, ((0, 0), (0, 0), (0, Lp - Lout)))
        y_in = jnp.pad(y, ((0, 0), (0, 0), (0, Lp - Lout)))
    else:
        y_in = y                                     # raw dtype; cast happens in-kernel

    Lt = _pick_ltile(Lp, ltile)
    T = Lp // Lt

    # Channel padding to sublane multiples; weights as (Cout_p, K*Cin_p), col = k*Cin_p+c.
    Cin_p = _round_up(Cin, sub)
    Cout_p = _round_up(Cout, 8)
    w_kc = jnp.transpose(w, (0, 2, 1))               # (Cout, K, Cin)
    w_kc = jnp.pad(w_kc, ((0, Cout_p - Cout), (0, 0), (0, Cin_p - Cin)))
    w2 = w_kc.reshape(Cout_p, K * Cin_p).astype(cdt)
    b2 = jnp.pad(b, (0, Cout_p - Cout)).reshape(Cout_p, 1).astype(jnp.float32)

    kernel = functools.partial(
        _upsampler_kernel, K=K, pad_l=pad_l, Lt=Lt, Lsig=Lp, Cx=Cx, Cy=Cy,
        neg_slope=neg_slope)

    # VMEM budget: double-buffered resident inputs + scratch + in-kernel values.
    osz = jnp.dtype(out_dtype).itemsize
    ysz = jnp.dtype(y.dtype).itemsize
    est_vmem = (2 * Cx * Lp * isz                    # resident xu block (2 bufs)
                + 2 * Cy * Lp * ysz                  # resident y block (raw dtype)
                + Cin_p * (Lp + 2 * _PAD_COLS) * isz  # zpad scratch
                + 2 * Cout_p * Lt * osz              # output tiles (2 bufs)
                + 2 * (Cout_p * K * Cin_p * isz + Cout_p * 4)   # weights + bias
                + Cin_p * (Lt + 2 * _PAD_COLS) * isz  # per-tile window
                + K * Cin_p * Lt * isz               # im2col slab
                + Cout_p * Lt * 4)                   # f32 accumulator
    try:
        phys_vmem = pltpu.get_tpu_info().vmem_capacity_bytes
    except Exception:
        phys_vmem = 64 * 1024 * 1024
    vmem_limit = int(min(int(0.85 * phys_vmem),
                         max(16 * 1024 * 1024, 2 * est_vmem)))

    cost = pl.CostEstimate(
        flops=int(2 * N * Cout * K * Cin * Lout),
        transcendentals=0,
        bytes_accessed=int(xu.size * isz + y_in.size * ysz + w2.size * isz
                           + b2.size * 4 + N * Cout_p * Lp * osz))

    out = pl.pallas_call(
        kernel,
        out_shape=jax.ShapeDtypeStruct((N, Cout_p, Lp), out_dtype),
        grid_spec=pltpu.PrefetchScalarGridSpec(
            num_scalar_prefetch=0,
            grid=(N, T),
            in_specs=[
                pl.BlockSpec((1, Cx, Lp), lambda n, t: (n, 0, 0)),      # xu (resident)
                pl.BlockSpec((1, Cy, Lp), lambda n, t: (n, 0, 0)),      # y  (resident)
                pl.BlockSpec((Cout_p, K * Cin_p), lambda n, t: (0, 0)),  # weights
                pl.BlockSpec((Cout_p, 1), lambda n, t: (0, 0)),          # bias
            ],
            out_specs=pl.BlockSpec((1, Cout_p, Lt), lambda n, t: (n, 0, t)),
            scratch_shapes=[pltpu.VMEM((Cin_p, Lp + 2 * _PAD_COLS), cdt)],
        ),
        compiler_params=pltpu.CompilerParams(
            dimension_semantics=("parallel", "arbitrary"),
            vmem_limit_bytes=vmem_limit),
        cost_estimate=cost,
    )(xu, y_in, w2, b2)

    if Cout_p != Cout or Lp != Lout:
        out = out[:, :Cout, :Lout]
    return out


def _reference_forward(x, y, w, b, *, neg_slope=0.01):
    """Pure-JAX reference (no Pallas) for correctness checking."""
    xu = linear_upsample_2x(x)
    xc = jnp.concatenate([xu, y], axis=1)
    K = w.shape[2]
    pad_l = (K - 1) // 2
    pad_r = (K - 1) - pad_l
    out = jax.lax.conv_general_dilated(
        xc, w, window_strides=(1,), padding=[(pad_l, pad_r)],
        dimension_numbers=("NCH", "OIH", "NCH"))
    out = out + b[None, :, None]
    return jnp.where(out >= 0, out, neg_slope * out)


if __name__ == "__main__":
    # Small shapes consistent with the module:
    #   x: (N, Cx, L) pre-upsample input; y: (N, Cy, 2L) lateral skip input.
    N, Cx, L = 2, 4, 128
    Cy = 4
    Cin = Cx + Cy          # Conv1d in_channels
    Cout = 8               # Conv1d out_channels
    K = 5                  # kernel_size (odd -> symmetric 'same' padding)

    key = jax.random.PRNGKey(0)
    kx, ky, kw, kb = jax.random.split(key, 4)
    x = jax.random.normal(kx, (N, Cx, L), dtype=jnp.float32)
    y = jax.random.normal(ky, (N, Cy, 2 * L), dtype=jnp.float32)
    w = 0.1 * jax.random.normal(kw, (Cout, Cin, K), dtype=jnp.float32)
    b = 0.1 * jax.random.normal(kb, (Cout,), dtype=jnp.float32)

    ref = jax.block_until_ready(_reference_forward(x, y, w, b))

    # f32 compute path, ltile=128 -> Lout=256 split into 2 lane-dense tiles.
    out_f32 = jax.block_until_ready(
        upsampler_forward(x, y, w, b, ltile=128, compute_dtype=jnp.float32))
    assert out_f32.shape == (N, Cout, 2 * L)
    assert jnp.allclose(out_f32, ref, atol=2e-5, rtol=2e-5), "f32 kernel mismatch"

    # Default bf16-operand path (f32 accumulation / epilogue): looser tolerance.
    out_bf16 = jax.block_until_ready(upsampler_forward(x, y, w, b, ltile=128))
    assert out_bf16.shape == (N, Cout, 2 * L)
    max_err = float(jnp.max(jnp.abs(out_bf16 - ref)))
    assert max_err < 5e-2, f"bf16 kernel mismatch (max abs err {max_err})"

    print("KERNEL_OK")
</pallas_src>

<mosaic_0001>
module attributes {stable_mosaic.version = 11 : i64} {
  func.func @_upsampler_kernel(%arg0: i32, %arg1: i32, %arg2: memref<1x4x256xf32, #tpu.memory_space<vmem>>, %arg3: memref<1x4x256xf32, #tpu.memory_space<vmem>>, %arg4: memref<8x40xf32, #tpu.memory_space<vmem>>, %arg5: memref<8x1xf32, #tpu.memory_space<vmem>>, %arg6: memref<1x8x128xf32, #tpu.memory_space<vmem>>, %arg7: memref<8x512xf32, #tpu.memory_space<vmem>>) attributes {dimension_semantics = [#tpu.dimension_semantics<parallel>, #tpu.dimension_semantics<arbitrary>], iteration_bounds = array<i64: 2, 2>, scalar_prefetch = 0 : i64, scratch_operands = 1 : i64, tpu.core_type = #tpu.core_type<tc>, window_params = [{transform_indices = @transform_0, window_bounds = array<i64: 1, 4, 256>}, {transform_indices = @transform_1, window_bounds = array<i64: 1, 4, 256>}, {pipeline_mode = #tpu.pipeline_mode<synchronous>, transform_indices = @transform_2, window_bounds = array<i64: 8, 40>}, {pipeline_mode = #tpu.pipeline_mode<synchronous>, transform_indices = @transform_3, window_bounds = array<i64: 8, 1>}, {transform_indices = @transform_4, window_bounds = array<i64: 1, 8, 128>}]} {
    %c0_i32 = arith.constant 0 : i32
    %0 = arith.cmpi eq, %arg1, %c0_i32 : i32
    %1 = arith.extui %0 : i1 to i32
    %c0_i32_0 = arith.constant 0 : i32
    %2 = arith.cmpi ne, %1, %c0_i32_0 : i32
    scf.if %2 {
      %cst_10 = arith.constant 0.000000e+00 : f32
      %26 = vector.broadcast %cst_10 : f32 to vector<8x128xf32>
      %c0_11 = arith.constant 0 : index
      %c0_12 = arith.constant 0 : index
      %27 = vector.load %arg7[%c0_11, %c0_12] : memref<8x512xf32, #tpu.memory_space<vmem>>, vector<8x128xf32>
      tpu.vector_store %arg7[%c0_11, %c0_12], %26 {strides = array<i32>} : memref<8x512xf32, #tpu.memory_space<vmem>>, vector<8x128xf32>,
      %c0_13 = arith.constant 0 : index
      %c384 = arith.constant 384 : index
      %28 = vector.load %arg7[%c0_13, %c384] : memref<8x512xf32, #tpu.memory_space<vmem>>, vector<8x128xf32>
      tpu.vector_store %arg7[%c0_13, %c384], %26 {strides = array<i32>} : memref<8x512xf32, #tpu.memory_space<vmem>>, vector<8x128xf32>,
      %c0_14 = arith.constant 0 : index
      %c0_15 = arith.constant 0 : index
      %c0_16 = arith.constant 0 : index
      %29 = vector.load %arg2[%c0_14, %c0_15, %c0_16] : memref<1x4x256xf32, #tpu.memory_space<vmem>>, vector<1x4x256xf32>
      %30 = vector.shape_cast %29 : vector<1x4x256xf32> to vector<4x256xf32>
      %c0_17 = arith.constant 0 : index
      %c128 = arith.constant 128 : index
      %31 = vector.load %arg7[%c0_17, %c128] : memref<8x512xf32, #tpu.memory_space<vmem>>, vector<4x256xf32>
      tpu.vector_store %arg7[%c0_17, %c128], %30 {strides = array<i32>} : memref<8x512xf32, #tpu.memory_space<vmem>>, vector<4x256xf32>,
      %c0_18 = arith.constant 0 : index
      %c0_19 = arith.constant 0 : index
      %c0_20 = arith.constant 0 : index
      %32 = vector.load %arg3[%c0_18, %c0_19, %c0_20] : memref<1x4x256xf32, #tpu.memory_space<vmem>>, vector<1x4x256xf32>
      %33 = vector.shape_cast %32 : vector<1x4x256xf32> to vector<4x256xf32>
      %c4 = arith.constant 4 : index
      %c128_21 = arith.constant 128 : index
      %34 = vector.load %arg7[%c4, %c128_21] : memref<8x512xf32, #tpu.memory_space<vmem>>, vector<4x256xf32>
      tpu.vector_store %arg7[%c4, %c128_21], %33 {strides = array<i32>} : memref<8x512xf32, #tpu.memory_space<vmem>>, vector<4x256xf32>,
    } else {
    }
    %c128_i32 = arith.constant 128 : i32
    %3 = arith.muli %arg1, %c128_i32 : i32
    %4 = tpu.assume_multiple %3, 128 : i32
    %c0 = arith.constant 0 : index
    %5 = arith.index_cast %4 : i32 to index
    %6 = vector.load %arg7[%c0, %5] : memref<8x512xf32, #tpu.memory_space<vmem>>, vector<8x384xf32>
    %7 = vector.extract_strided_slice %6 {offsets = [0, 126], sizes = [8, 128], strides = [1, 1]} : vector<8x384xf32> to vector<8x128xf32>
    %8 = vector.extract_strided_slice %6 {offsets = [0, 127], sizes = [8, 128], strides = [1, 1]} : vector<8x384xf32> to vector<8x128xf32>
    %9 = vector.extract_strided_slice %6 {offsets = [0, 128], sizes = [8, 128], strides = [1, 1]} : vector<8x384xf32> to vector<8x128xf32>
    %10 = vector.extract_strided_slice %6 {offsets = [0, 129], sizes = [8, 128], strides = [1, 1]} : vector<8x384xf32> to vector<8x128xf32>
    %11 = vector.extract_strided_slice %6 {offsets = [0, 130], sizes = [8, 128], strides = [1, 1]} : vector<8x384xf32> to vector<8x128xf32>
    %12 = tpu.concatenate %7, %8, %9, %10, %11 in 0 : vector<8x128xf32>, vector<8x128xf32>, vector<8x128xf32>, vector<8x128xf32>, vector<8x128xf32> -> vector<40x128xf32>
    %c0_1 = arith.constant 0 : index
    %c0_2 = arith.constant 0 : index
    %13 = vector.load %arg4[%c0_1, %c0_2] : memref<8x40xf32, #tpu.memory_space<vmem>>, vector<8x40xf32>
    %cst = arith.constant dense<0.000000e+00> : vector<8x128xf32>
    %14 = tpu.matmul %13, %12, %cst {dimension_numbers = #tpu.dot_dimension_numbers<[1], [0], [0], [1], [0, 0, 1, 1], [], []>} : vector<8x40xf32>, vector<40x128xf32>, vector<8x128xf32> -> vector<8x128xf32>
    %c0_3 = arith.constant 0 : index
    %c0_4 = arith.constant 0 : index
    %15 = vector.load %arg5[%c0_3, %c0_4] : memref<8x1xf32, #tpu.memory_space<vmem>>, vector<8x1xf32>
    %16 = vector.broadcast %15 : vector<8x1xf32> to vector<8x128xf32>
    %17 = arith.addf %14, %16 : vector<8x128xf32>
    %cst_5 = arith.constant 0.000000e+00 : f32
    %18 = vector.broadcast %cst_5 : f32 to vector<8x128xf32>
    %19 = arith.cmpf oge, %17, %18 : vector<8x128xf32>
    %cst_6 = arith.constant 0.00999999977 : f32
    %20 = vector.broadcast %cst_6 : f32 to vector<8x128xf32>
    %21 = arith.mulf %20, %17 : vector<8x128xf32>
    %22 = arith.select %19, %17, %21 : vector<8x128xi1>, vector<8x128xf32>
    %c0_7 = arith.constant 0 : index
    %c0_8 = arith.constant 0 : index
    %c0_9 = arith.constant 0 : index
    %23 = vector.load %arg6[%c0_7, %c0_8, %c0_9] : memref<1x8x128xf32, #tpu.memory_space<vmem>>, vector<1x8x128xf32>
    %24 = vector.shape_cast %23 : vector<1x8x128xf32> to vector<8x128xf32>
    %25 = vector.shape_cast %22 : vector<8x128xf32> to vector<1x8x128xf32>
    tpu.vector_store %arg6[%c0_7, %c0_8, %c0_9], %25 {strides = array<i32>} : memref<1x8x128xf32, #tpu.memory_space<vmem>>, vector<1x8x128xf32>,
    return
  }
  func.func @transform_0(%arg0: i32, %arg1: i32) -> (i32, i32, i32) {
    %c0_i32 = arith.constant 0 : i32
    %c0_i32_0 = arith.constant 0 : i32
    %c0_i32_1 = arith.constant 0 : i32
    return %arg0, %c0_i32, %c0_i32_0 : i32, i32, i32
  }
  func.func @transform_1(%arg0: i32, %arg1: i32) -> (i32, i32, i32) {
    %c0_i32 = arith.constant 0 : i32
    %c0_i32_0 = arith.constant 0 : i32
    %c0_i32_1 = arith.constant 0 : i32
    return %arg0, %c0_i32, %c0_i32_0 : i32, i32, i32
  }
  func.func @transform_2(%arg0: i32, %arg1: i32) -> (i32, i32) {
    %c0_i32 = arith.constant 0 : i32
    %c0_i32_0 = arith.constant 0 : i32
    %c0_i32_1 = arith.constant 0 : i32
    return %c0_i32, %c0_i32_0 : i32, i32
  }
  func.func @transform_3(%arg0: i32, %arg1: i32) -> (i32, i32) {
    %c0_i32 = arith.constant 0 : i32
    %c0_i32_0 = arith.constant 0 : i32
    %c0_i32_1 = arith.constant 0 : i32
    return %c0_i32, %c0_i32_0 : i32, i32
  }
  func.func @transform_4(%arg0: i32, %arg1: i32) -> (i32, i32, i32) {
    %c0_i32 = arith.constant 0 : i32
    %c0_i32_0 = arith.constant 0 : i32
    return %arg0, %c0_i32, %arg1 : i32, i32, i32
  }
}

</mosaic_0001>

<bundles_post_ra>
// kernel: tpu_custom_call.1
= control target key start
LH: loop header
LB: loop body
LE: loop exit
PB: predicated region body
PF: predicated region fallthrough
CT: control target
= control target key end

     0   :  { %s1268_s0 = inlined_call_operand.hbm [shape: f32[2,4,256], index: 0, kind: input, shape index: {}]   ;;  %s1269_s1 = inlined_call_operand.hbm [shape: f32[2,4,256], index: 1, kind: input, shape index: {}]   ;;  %s1270_s2 = inlined_call_operand.vmem [shape: f32[8,40], index: 2, kind: input, shape index: {}]   ;;  %s1271_s3 = inlined_call_operand.vmem [shape: f32[8,1], index: 3, kind: input, shape index: {}]   ;;  %s1272_s4 = inlined_call_operand.hbm [shape: f32[2,8,256], index: 4, kind: output, shape index: {}]  }
   0x1   :  { %1281 = sst [smem:[#allocation16_spill]] %s1268_s0 }
   0x2   :  { %9 = vsyncpa [#allocation4], 0 }
   0x3   :  { %11 = vsyncpa [#allocation4 + $0x1], 0 }
   0x4   :  { %12 = vsyncpa [#allocation7], 0 }
   0x5   :  { %14 = vsyncpa [#allocation7 + $0x1], 0 }
   0x6   :  { %15 = vsyncpa [#allocation5], 0 }
   0x7   :  { %17 = vsyncpa [#allocation5 + $0x1], 0  ;;  %s974_s15 = smov 0   ;;  %s976_s16 = smov 0  }
   0x8   :  { %s978_s17 = smov 0   ;;  %s980_s18 = smov 0  }
   0x9   :  { %s982_s19 = smov 0   ;;  %s984_s20 = smov 0  }
   0xa   :  { %s986_s21 = smov 0   ;;  %s988_s22 = smov 0  }
   0xb   :  { %s990_s23 = smov 0   ;;  %s992_s24 = smov 0  }
   0xc   :  { %s994_s25 = smov 0  }
   0xd LB: > { %1282 = sst [smem:[#allocation12_spill]] %s926_s23  ;;  %s552_s26 = sadd.s32 4294967295, %s934_s25   ;;  %s934_s25 = sphi %s994_s25, %s23_s25   ;;  %s930_s24 = sphi %s992_s24, %s1304_s24   ;;  %s926_s23 = sphi %s990_s23, %s1303_s23   ;;  %s922_s22 = sphi %s988_s22, %s1302_s22   ;;  %s918_s21 = sphi %s986_s21, %s1301_s21   ;;  %s914_s20 = sphi %s984_s20, %s1310_s20   ;;  %s910_s19 = sphi %s982_s19, %s1309_s19   ;;  %s906_s18 = sphi %s980_s18, %s1308_s18   ;;  %s902_s17 = sphi %s978_s17, %s1307_s17   ;;  %s898_s16 = sphi %s976_s16, %s1306_s16   ;;  %s894_s15 = sphi %s974_s15, %s1305_s15  }
   0xe   : > { %1283 = sst [smem:[#allocation13_spill]] %s930_s24  ;;  %s553_s27 = sadd.s32 4294967294, %s934_s25  }
   0xf   : > { %s32_s28 = sadd.s32 1, %s926_s23  ;;  %s35_s29 = sadd.s32 1, %s930_s24 }
  0x10   : > { %p33_p0 = scmp.ge.s32.totalorder %s32_s28, 2  ;;  %s42_s30 = sadd.s32 1, %s914_s20 }
  0x11   : > { %p49_p1 = scmp.ne.s32.totalorder %s914_s20, %s910_s19  ;;  %p50_p2 = scmp.eq.s32.totalorder %s934_s25, 0 }
  0x12   : > { %s1312_s28 = smov (%p33_p0, %s32_s28), 0  ;;  %s1314_s29 = smov (!%p33_p0, %s35_s29), %s930_s24 }
  0x13   : > { %1284 = sst [smem:[#allocation14_spill]] %s1312_s28  ;;  %p1038_p3 = por %p50_p2, %p49_p1 }
  0x14   : > { %p55_p4 = scmp.ne.s32.totalorder %s910_s19, %s906_s18  ;;  %p37_p5 = scmp.ge.s32.totalorder %s1314_s29, 2 }
  0x15   : > { %p56_p6 = scmp.eq.s32.totalorder %s552_s26, 0  ;;  %s134_s6 = ssub.s32 %s926_s23, %s1312_s28 }
  0x16   : > { %s138_s7 = sadd.s32 1, %s902_s17  ;;  %s1316_s29 = smov (%p37_p5, %s1314_s29), 0 }
  0x17   : > { %1286 = sst [smem:[#allocation15_spill]] %s1316_s29  ;;  %p1048_p7 = por %p56_p6, %p55_p4 }
  0x18   : > { %p148_p8 = scmp.ne.s32.totalorder %s902_s17, %s898_s16  ;;  %s39_s9 = ssub.s32 %s930_s24, %s1316_s29 }
  0x19   : > { %s1287_s8 = scalar_select %p1048_p7, 1, 0 }
  0x1a   : > { %p149_p9 = scmp.eq.s32.totalorder %s552_s26, 3  ;;  %p40_p10 = scmp.eq.s32.totalorder %s39_s9, 0 }
  0x1b   : > { %s135_s10 = sor.u32 %s134_s6, %s39_s9  ;;  %p154_p13 = scmp.ne.s32.totalorder %s898_s16, %s894_s15 }
  0x1c   : > { %p136_p11 = scmp.eq.s32.totalorder %s135_s10, 0  ;;  %p1056_p12 = por %p149_p9, %p148_p8 }
  0x1d   : > { %s1061_s12 = scalar_select %p40_p10, %s914_s20, %s42_s30  }
  0x1e   : > { %s1288_s11 = scalar_select %p1056_p12, 1, 0 }
  0x1f   : > { %s1064_s13 = scalar_select %p136_p11, %s902_s17, %s138_s7  }
  0x20   : > { %p155_p0 = scmp.eq.s32.totalorder %s553_s27, 3  ;;  %p619_p1 = scmp.lt.s32.totalorder %s934_s25, 4 }
  0x21   : > { %s1074_s18 = sand.u32 1, %s914_s20   ;;  %s1275_s6 = sshll.u32 %s930_s24, 7 }
  0x22   : > { %p1069_p2 = por %p155_p0, %p154_p13  ;;  %s1274_s26 = sshll.u32 %s1074_s18, 3 }
  0x23   : > { %s1290_s0 = sld [smem:[#allocation16_spill]]  ;;  %s185_s27 = scalar_lea.vmem [#allocation3], %s1274_s26 }
  0x24   : > { %s1289_s14 = scalar_select %p1069_p2, 1, 0 }
  0x25   : > { %s193_s10 = sshll.u32 %s185_s27, 4  ;;  %p1091_p4 = pnand %p619_p1, %p1038_p3  ;;  %s1087_s10 = int_to_ptr.vmem [resolvable:$true] %s193_s10 }
  0x26   : > { %s182_s9 = scalar_lea.sflag [#allocation4], %s1074_s18 }
  0x27   : > { %p750_p9 = pneg %p1091_p4 }
  0x29   : > { %s1083_s7 = scalar_lea.hbm %s1290_s0, %s1275_s6  ;;  %s753_s5 = scalar_lea.hbm %s1290_s0, 256 }
  0x2a   : > { %s748_s30 = scalar_lea.hbm %s1083_s7, 128  ;;  %p754_p3 = scmp.lt.u32.totalorder %s1083_s7, %s1290_s0 }
  0x2b   : > { %p749_p8 = scmp.ne.s32.totalorder %s1083_s7, %s748_s30  ;;  %p755_p13 = scmp.lt.u32.totalorder %s753_s5, %s748_s30 }
  0x2c   : > { %p757_p1 = scmp.lt.u32.totalorder %s748_s30, %s1083_s7 }
  0x2d   : > { %p751_p10 = pnand %p750_p9, %p749_p8  ;;  %p756_p0 = por %p755_p13, %p754_p3 }
  0x2f   : > { %p752_p11 = pneg %p751_p10  ;;  %p758_p5 = por %p757_p1, %p756_p0 }
  0x31   : > { %p759_p6 = pnand %p758_p5, %p752_p11 }
  0x33   : > { %762 = shalt.err (!%p759_p6)
}
  0x34   : > { %s763_s23 = scalar_lea.vmem %s1087_s10, 128  ;;  %s936_s26 = smov [#allocation3]  }
  0x35   : > { %p764_p8 = scmp.ne.s32.totalorder %s1087_s10, %s763_s23  ;;  %s768_s27 = sshll.u32 %s936_s26, 4  ;;  %s769_s27 = int_to_ptr.vmem [resolvable:$false] %s768_s27 }
  0x36   : > { %s770_s28 = scalar_lea.vmem %s769_s27, 256  ;;  %p771_p12 = scmp.lt.s32.totalorder %s1087_s10, %s769_s27 }
  0x37   : > { %p766_p10 = pnand %p764_p8, %p750_p9  ;;  %p772_p3 = scmp.lt.s32.totalorder %s770_s28, %s763_s23 }
  0x39   : > { %p767_p2 = pneg %p766_p10  ;;  %p773_p13 = por %p772_p3, %p771_p12 }
  0x3b   : > { %p774_p0 = pnand %p773_p13, %p767_p2 }
  0x3d   : > { %777 = shalt.err (!%p774_p0)
}
  0x3e   : > { %611 = dma.hbm_to_vmem [thread:$0]  (!%p1091_p4), %s1083_s7, 128, %s1087_s10, %s182_s9  }
  0x3f   : > { %p1292_p5 = scmp.lt.s32.totalorder %s934_s25, 5  ;;  %p1293_p6 = scmp.ge.s32.totalorder %s934_s25, 1 }
  0x40   : > { %s1295_s23 = sshll.u32 %s930_s24, 7  ;;  %s1296_s27 = sshll.u32 %s1074_s18, 3 }
  0x41   : > { %p1127_p11 = pnand %p1293_p6, %p1292_p5  ;;  %s1136_s26 = scalar_lea.hbm %s1269_s1, %s1295_s23 }
  0x42   : > { %s204_s28 = scalar_lea.vmem [#allocation6], %s1296_s27  ;;  %s201_s7 = scalar_lea.sflag [#allocation7], %s1074_s18 }
  0x43   : > { %s1294_s6 = scalar_select %p1127_p11, 1, 0 }
  0x44   : > { %s212_s0 = sshll.u32 %s204_s28, 4  ;;  %s778_s10 = scalar_lea.hbm %s1136_s26, 128  ;;  %s213_s0 = int_to_ptr.vmem [resolvable:$true] %s212_s0 }
  0x45   : > { %p779_p12 = scmp.ne.s32.totalorder %s1136_s26, %s778_s10  ;;  %s783_s23 = scalar_lea.hbm %s1269_s1, 256 }
  0x46   : > { %p784_p8 = scmp.lt.u32.totalorder %s1136_s26, %s1269_s1  ;;  %p785_p10 = scmp.lt.u32.totalorder %s783_s23, %s778_s10 }
  0x47   : > { %p781_p2 = pnand %p779_p12, %p750_p9  ;;  %p787_p13 = scmp.lt.u32.totalorder %s778_s10, %s1136_s26 }
  0x48   : > { %p786_p3 = por %p785_p10, %p784_p8 }
  0x49   : > { %p782_p1 = pneg %p781_p2 }
  0x4a   : > { %p788_p0 = por %p787_p13, %p786_p3 }
  0x4c   : > { %p789_p5 = pnand %p788_p0, %p782_p1 }
  0x4e   : > { %792 = shalt.err (!%p789_p5)
}
  0x4f   : > { %s793_s18 = scalar_lea.vmem %s213_s0, 128  ;;  %s937_s27 = smov [#allocation6]  }
  0x50   : > { %p794_p6 = scmp.ne.s32.totalorder %s213_s0, %s793_s18  ;;  %s798_s24 = sshll.u32 %s937_s27, 4  ;;  %s799_s24 = int_to_ptr.vmem [resolvable:$false] %s798_s24 }
  0x51   : > { %s800_s28 = scalar_lea.vmem %s799_s24, 256  ;;  %p801_p7 = scmp.lt.s32.totalorder %s213_s0, %s799_s24 }
  0x52   : > { %p796_p12 = pnand %p794_p6, %p750_p9  ;;  %p802_p11 = scmp.lt.s32.totalorder %s800_s28, %s793_s18 }
  0x54   : > { %p797_p2 = pneg %p796_p12  ;;  %p803_p8 = por %p802_p11, %p801_p7 }
  0x56   : > { %p804_p10 = pnand %p803_p8, %p797_p2 }
  0x58   : > { %807 = shalt.err (!%p804_p10)
}
  0x59   : > { %614 = dma.hbm_to_vmem [thread:$0]  (!%p1091_p4), %s1136_s26, 128, %s213_s0, %s201_s7  }
  0x5a   : > { %p1297_p1 = scmp.ne.s32.totalorder %s1294_s6, 0 }
  0x5b   : > { %s223_s10 = sand.u32 (!%p1297_p1), 1, %s910_s19   ;;  %p1298_p9 = scmp.ne.s32.totalorder (!%p1297_p1), %s1287_s8, 0 }
  0x5c   : > { %221 = sbr.rel (%p1297_p1) target bundleno = 598 (0x256), region = 36  ;;  %s563_s9 = sshll.u32 (!%p1297_p1), %s223_s10, 3 }
  0x5d   : > { %s224_s23 = scalar_lea.sflag (!%p1297_p1), [#allocation4], %s223_s10  ;;  %s227_s30 = scalar_lea.vmem (!%p1297_p1), [#allocation3], %s563_s9 }
  0x63   : > { %881 = dma.done.wait (%p1298_p9), %s224_s23, 128  }
  0x64   : > { %883 = vsyncadd (%p1298_p9), %s224_s23, 4294967168  ;;  %s233_s5 = scalar_lea.sflag [#allocation7], %s223_s10  ;;  %s236_s18 = scalar_lea.vmem [#allocation6], %s563_s9 }
  0x65   : > { %885 = dma.done.wait (%p1298_p9), %s233_s5, 128  }
  0x66   : > { %887 = vsyncadd (%p1298_p9), %s233_s5, 4294967168  ;;  %s263_s0 = sand.u32 1, %s898_s16   ;;  %p566_p7 = scmp.ne.s32.totalorder %s918_s21, 0 }
  0x67   : > { %s1174_s29 = sshll.u32 %s263_s0, 3  ;;  %v272_v0 = vld [vmem:[%s227_s30] sm:$0xff] (!%p566_p7)  ;;  %v278_v1 = vld [vmem:[%s236_s18] sm:$0xff] (!%p566_p7)  ;;  %v938_v2 = vmov (!%p566_p7), 0.0  }
  0x68   : > { %s265_s6 = scalar_lea.vmem [#allocation8], %s1174_s29  ;;  %269 = sbr.rel (%p566_p7) target bundleno = 111 (0x6f), region = 48  ;;  %270 = vst [vmem:[#allocation2] sm:$0xff] (!%p566_p7), %v938_v2  ;;  %271 = vst [vmem:[#allocation2 + $0x18] sm:$0xff] (!%p566_p7), %v938_v2  ;;  %v274_v3 = vcombine.high (!%p566_p7), %v272_v0, %v272_v0  ;;  %v280_v4 = vcombine.low (!%p566_p7), %v278_v1, %v278_v1 }
  0x69   : > { %276 = vst [vmem:[#allocation2 + $0x8] sm:$0xf] (!%p566_p7), %v272_v0  ;;  %283 = vst [vmem:[#allocation2 + $0x10] sm:$0xf0] (!%p566_p7), %v278_v1 }
  0x6a   : > { %277 = vst [vmem:[#allocation2 + $0x10] sm:$0xf] (!%p566_p7), %v274_v3  ;;  %282 = vst [vmem:[#allocation2 + $0x8] sm:$0xf0] (!%p566_p7), %v280_v4 }
  0x6f PF: > { %s567_s8 = sshll.u32 %s918_s21, 7  ;;  %s939_s24 = smov 126   ;;  %v944_v10 = vmov 0.0|0.0   ;;  %vm298_vm0 = vcmask 1039360   ;;  %vm307_vm1 = vcmask 1022976   ;;  %vm945_vm2 = vmmov 0  }
  0x70   : > { %s285_s26 = sshra.s32 %s567_s8, 7  ;;  %s940_s28 = smov 127   ;;  %596 = vmatprep.subr.bf16.mxu0 %v944_v10  ;;  %v946_v20 = vmov 0.0   ;;  %vm313_vm3 = vcmask 1014784   ;;  %v947_v25 = vmov 0   ;;  %v316_v27 = vld [vmem:[%s1271_s3] sm:$0xff] }
  0x71   : > { %s568_s7 = sshll.u32 %s285_s26, 3  ;;  %s941_s10 = smov 124   ;;  %593 = vmatprep.mubr.msk.f32.mxu0 %vm945_vm2, %v946_v20  ;;  %746 = vset.pattern.permute.xlu1 %v947_v25  ;;  %vm340_vm4 = vcmask 15360   ;;  %v315_v46 = vld [vmem:[%s1270_s2] sm:$0xff]  ;;  %vm350_vm5 = vcmask 326656  }
  0x72   : > { %s288_s27 = scalar_lea.vmem [#allocation2], %s568_s7  ;;  %s942_s9 = smov 125   ;;  %747 = vset.pattern.permute.xlu0 %v947_v25 }
  0x73   : > { %v289_v5 = vld [vmem:[%s288_s27] sm:$0xff]  ;;  %v290_v6 = vld [vmem:[%s288_s27 + $0x8] sm:$0xff]  ;;  %v291_v7 = vld [vmem:[%s288_s27 + $0x10] sm:$0xff]  ;;  %s943_s23 = smov 2   ;;  %s571_s26 = sshll.u32 %s922_s22, 1 }
  0x74   : > { %v721_v8 = vpack.i.bf16 %v290_v6, %v289_v5  ;;  %300 = vrot.lane.b32.xlu1 %v290_v6, %s939_s24  ;;  %v726_v9 = vpack.i.bf16 %v291_v7, %v290_v6  ;;  %s440_s7 = sadd.s32 %s918_s21, %s571_s26  ;;  %s444_s24 = sshll.u32 %s265_s6, 4  ;;  %s1204_s24 = int_to_ptr.vmem [resolvable:$true] %s444_s24 }
  0x75   : > { %s572_s27 = sshll.u32 %s440_s7, 7  ;;  %s429_s21 = scalar_lea.sflag [#allocation5], %s263_s0 }
  0x76   : > { %722 = vrot.lane.b32.xlu0 %v721_v8, %s940_s28  ;;  %s808_s22 = scalar_lea.vmem %s1204_s24, 128  ;;  %p1299_p11 = scmp.ne.s32.totalorder %s1288_s11, 0 }
  0x77   : > { %p809_p4 = scmp.ne.s32.totalorder %s1204_s24, %s808_s22 }
  0x78   : > { %309 = vrot.lane.b32.xlu1 %v290_v6, %s941_s10 }
  0x79   : > { %p810_p3 = pnand %p809_p4, %p1299_p11 }
  0x7a   : > { %727 = vrot.lane.b32.xlu0 %v726_v9, %s942_s9  ;;  %s1202_s9 = scalar_lea.hbm %s1272_s4, %s572_s27 }
  0x7b   : > { %p811_p13 = pneg %p810_p3 }
  0x7c   : > { %732 = vrot.lane.b32.xlu1 %v721_v8, %s943_s23 }
  0x7e   : > { %311 = vrot.lane.b32.xlu0 %v291_v7, %s941_s10 }
  0xe6   : > { %v301_v14 = vpop.permute.xlu1 %300 }
  0xe8   : > { %v723_v11 = vpop.permute.xlu0 %722 }
  0xe9   : > { %v725_v12 = vunpack.i.h.bf16 %v723_v11  ;;  %v724_v13 = vunpack.i.l.bf16 %v723_v11 }
  0xea   : > { %v310_v23 = vpop.permute.xlu1 %309 }
  0xeb   : > { %v299_v15 = vsel %vm298_vm0, %v724_v13, %v725_v12 }
  0xec   : > { %v736_v16 = vpack.i.bf16 %v725_v12, %v299_v15  ;;  %v728_v17 = vpop.permute.xlu0 %727 }
  0xed   : > { %v730_v18 = vunpack.i.h.bf16 %v728_v17  ;;  %v729_v19 = vunpack.i.l.bf16 %v728_v17 }
  0xee   : > { %737 = vrot.lane.b32.xlu0 %v736_v16, %s943_s23  ;;  %v733_v28 = vpop.permute.xlu1 %732 }
  0xef   : > { %v308_v21 = vsel %vm307_vm1, %v729_v19, %v730_v18  ;;  %v735_v29 = vunpack.i.h.bf16 %v733_v28  ;;  %v734_v30 = vunpack.i.l.bf16 %v733_v28 }
  0xf0   : > { %v741_v22 = vpack.i.bf16 %v308_v21, %v729_v19  ;;  %v312_v24 = vpop.permute.xlu0 %311 }
  0xf1   : > { %v314_v26 = vsel %vm313_vm3, %v310_v23, %v312_v24  ;;  %v341_v34 = vsel %vm340_vm4, %v734_v30, %v735_v29 }
  0xf2   : > { %742 = vrot.lane.b32.xlu1 %v741_v22, %s943_s23  ;;  %330 = vrot.lane.b32.xlu0 %v301_v14, %s943_s23 }
  0xf6   : > { %336 = vrot.lane.b32.xlu1 %v310_v23, %s943_s23  ;;  %338 = vrot.lane.b32.xlu0 %v314_v26, %s943_s23  ;;  %s948_s23 = smov [#allocation8]  }
  0xf7   : > { %s812_s30 = sshll.u32 %s948_s23, 4  ;;  %s813_s30 = int_to_ptr.vmem [resolvable:$false] %s812_s30 }
  0xf8   : > { %s814_s5 = scalar_lea.vmem %s813_s30, 256  ;;  %p815_p0 = scmp.lt.s32.totalorder %s1204_s24, %s813_s30 }
  0xf9   : > { %p816_p5 = scmp.lt.s32.totalorder %s814_s5, %s808_s22 }
  0xfa   : > { %319 = vperm.xlu1 %746, %v316_v27  }
  0xfb   : > { %p817_p6 = por %p816_p5, %p815_p0 }
  0xfd   : > { %p818_p12 = pnand %p817_p6, %p811_p13 }
 0x160   : > { %v738_v31 = vpop.permute.xlu0 %737 }
 0x161   : > { %v740_v32 = vunpack.i.h.bf16 %v738_v31  ;;  %v739_v33 = vunpack.i.l.bf16 %v738_v31 }
 0x163   : > { %v342_v35 = vsel %vm340_vm4, %v739_v33, %v740_v32 }
 0x164   : > { %v743_v36 = vpop.permute.xlu1 %742  ;;  %v597_v37 = vpack.c.bf16 %v342_v35, %v341_v34  ;;  %v331_v38 = vpop.permute.xlu0 %330 }
 0x165   : > { %v745_v39 = vunpack.i.h.bf16 %v743_v36  ;;  %v744_v40 = vunpack.i.l.bf16 %v743_v36 }
 0x166   : > { %598 = vmatpush3.bf16.msra.mxu0 %v597_v37 }
 0x167   : > { %v343_v41 = vsel %vm340_vm4, %v744_v40, %v745_v39  ;;  %599 = vmatprep.subr.bf16.mxu0 %v944_v10 }
 0x168   : > { %v600_v42 = vpack.c.bf16 %v343_v41, %v331_v38  ;;  %v337_v43 = vpop.permute.xlu1 %336  ;;  %v339_v44 = vpop.permute.xlu0 %338 }
 0x169   : > { %v344_v45 = vsel %vm340_vm4, %v337_v43, %v339_v44 }
 0x16a   : > { %601 = vmatpush3.bf16.msra.mxu0 %v600_v42 }
 0x16b   : > { %591 = vmatprep.subr.mxu0 %v946_v20 }
 0x16e   : > { %592 = vmatpush3.msra.mxu0 %v344_v45 }
 0x16f   : > { %594 = vmatmul.mubr.msk.f32.vlgmr.msra.gmra.mrb[0].mxu0 %vm350_vm5, %v315_v46 }
 0x179   : > { %v320_v47 = vpop.permute.xlu1 %319 }
 0x242   : > { %v420_v48 = vpop.f32.mrb[0].mxu0 }
 0x243   : > { %v421_v49 = vadd.f32 %v420_v48, %v320_v47  ;;  %v595_v50 = vpop.f32.mrb[1].mxu0 }
 0x245   : > { %vm424_vm6 = vcmp.ge.f32.partialorder %v421_v49, 0.0  ;;  %v425_v51 = vmul.f32 0.01, %v421_v49 }
 0x247   : > { %v426_v52 = vsel %vm424_vm6, %v421_v49, %v425_v51 }
 0x248   : > { %427 = vst [vmem:[%s265_s6] sm:$0xff] %v426_v52 }
 0x249   : > { %821 = shalt.err (!%p818_p12)
}
 0x24a   : > { %s822_s0 = scalar_lea.hbm %s1202_s9, 128  ;;  %s826_s18 = scalar_lea.hbm %s1272_s4, 512 }
 0x24b   : > { %p823_p2 = scmp.ne.s32.totalorder %s1202_s9, %s822_s0  ;;  %p827_p1 = scmp.lt.u32.totalorder %s1202_s9, %s1272_s4 }
 0x24c   : > { %p828_p9 = scmp.lt.u32.totalorder %s826_s18, %s822_s0  ;;  %p830_p4 = scmp.lt.u32.totalorder %s822_s0, %s1202_s9 }
 0x24d   : > { %p824_p8 = pnand %p823_p2, %p1299_p11 }
 0x24e   : > { %p829_p7 = por %p828_p9, %p827_p1 }
 0x24f   : > { %p825_p10 = pneg %p824_p8 }
 0x250   : > { %p831_p3 = por %p830_p4, %p829_p7 }
 0x252   : > { %p832_p13 = pnand %p831_p3, %p825_p10 }
 0x254   : > { %835 = shalt.err (!%p832_p13)
}
 0x255   : > { %606 = dma.vmem_to_hbm [thread:$0]  (%p1299_p11), %s1204_s24, 128, %s1202_s9, %s429_s21  }
 0x256 PF: > { %p620_p0 = scmp.ge.s32.totalorder %s934_s25, 2  ;;  %s456_s7 = sand.u32 1, %s894_s15  }
 0x257   : > { %p1300_p5 = scmp.ne.s32.totalorder %s1289_s14, 0  ;;  %s457_s27 = scalar_lea.sflag [#allocation5], %s456_s7 }
 0x259   : > { %p616_p6 = pnand %p620_p0, %p1300_p5 }
 0x25b   : > { %889 = dma.done.wait (!%p616_p6), %s457_s27, 128  }
 0x25c   : > { %891 = vsyncadd (!%p616_p6), %s457_s27, 4294967168  ;;  %s23_s25 = sadd.s32 1, %s934_s25   ;;  %s1301_s21 = sld [smem:[#allocation12_spill]] }
 0x25d   : > { %p20_p12 = scmp.ge.s32.totalorder %s23_s25, 6   ;;  %s1302_s22 = sld [smem:[#allocation13_spill]] }
 0x25e   : > { %s1303_s23 = sld [smem:[#allocation14_spill]]  ;;  %s1304_s24 = sld [smem:[#allocation15_spill]] }
 0x25f   : > { %s1305_s15 = smov %s898_s16  ;;  %s1306_s16 = smov %s902_s17 }
 0x260   : > { %s1307_s17 = smov %s1064_s13  ;;  %s1308_s18 = smov %s910_s19 }
 0x261   : > { %s1309_s19 = smov %s914_s20  ;;  %s1310_s20 = smov %s1061_s12 }
 0x262   :  { %22 = sbr.rel (!%p20_p12) target bundleno = 13 (0xd), region = 99 }
 0x269   :  { %462 = vsyncpa [#allocation4], 1 }
 0x26a   :  { %464 = vsyncpa [#allocation4 + $0x1], 1 }
 0x26b   :  { %465 = vsyncpa [#allocation7], 1 }
 0x26c   :  { %467 = vsyncpa [#allocation7 + $0x1], 1 }
 0x26d   :  { %468 = vsyncpa [#allocation5], 1 }
 0x26e   :  { %470 = vsyncpa [#allocation5 + $0x1], 1 }

</bundles_post_ra>
